<compile_context>
chip_gen: v7x
topology: tpu7x:2x2x1
jax: 0.10.0
libtpu: 0.0.40
codegen_flags: <defaults>
</compile_context>

<pallas_src>
import jax
import jax.numpy as jnp
from jax.experimental import pallas as pl
from jax.experimental.pallas import tpu as pltpu


BN_EPS = 1e-5
LEAKY_SLOPE = 0.02
H_PAD = 128      # lane-dense hidden width (f32 vreg lane count)
OUT_DIM = 2
N_VROWS = 8      # gamma1, beta1, gamma2, beta2, b3, 3 zero rows


def _round_up(n, m):
    return ((n + m - 1) // m) * m


def _generator_kernel(x_ref, p_ref, o_ref):
    """
    x_ref: (B, L)                      latent input
    p_ref: (Lp + 2*H_PAD + 8, H_PAD)   merged parameter slab (see header)
    o_ref: (B, 2)                      generator output
    """
    L = x_ref.shape[1]
    Lp = _round_up(L, 8)

    x = x_ref[...]

    # Static, 8-aligned row slices of the merged slab (free ref views; one DMA
    # brought the whole slab in).
    w1 = p_ref[0:L, :]
    w2 = p_ref[Lp:Lp + H_PAD, :]
    w3 = p_ref[Lp + H_PAD:Lp + 2 * H_PAD, :]
    v = p_ref[Lp + 2 * H_PAD:Lp + 2 * H_PAD + N_VROWS, :]   # (8, 128): all vectors

    g1, be1 = v[0:1], v[1:2]
    g2, be2 = v[2:3], v[3:4]
    b3 = v[4:5]
    # Note: gamma/beta rows are zero in the padded lanes, so padded hidden
    # columns stay exactly 0 through BN (scale = 0 * rsqrt(eps) = 0).

    def bn_lrelu(h, gamma, beta):
        # Training-mode BatchNorm folded into per-feature scale/shift.
        mean = jnp.mean(h, axis=0, keepdims=True)
        var = jnp.maximum(jnp.mean(h * h, axis=0, keepdims=True) - mean * mean, 0.0)
        scale = gamma * jax.lax.rsqrt(var + BN_EPS)      # (1, 128) row math
        shift = beta - mean * scale
        h = h * scale + shift
        return jnp.maximum(h, LEAKY_SLOPE * h)           # LeakyReLU(0.02)

    # ---- Layer 1: Linear (b1 cancelled by BN mean-subtract) + BN + LeakyReLU
    h = jnp.dot(x, w1, preferred_element_type=jnp.float32)
    h = bn_lrelu(h, g1, be1)

    # ---- Layer 2: Linear (b2 cancelled by BN) + BN + LeakyReLU
    h = jnp.dot(h, w2, preferred_element_type=jnp.float32)
    h = bn_lrelu(h, g2, be2)

    # ---- Layer 3: Linear + bias + tanh; store only the 2 real output columns
    out = jnp.dot(h, w3, preferred_element_type=jnp.float32) + b3
    o_ref[...] = jnp.tanh(out[:, :OUT_DIM])


def pack_params(p, latent_size, h_size):
    """Pack/pad raw params into the single VMEM slab the kernel expects.
    Done once, outside the hot path."""
    Lp = _round_up(latent_size, 8)
    rows = Lp + 2 * H_PAD + N_VROWS
    P = jnp.zeros((rows, H_PAD), jnp.float32)
    P = P.at[:latent_size, :h_size].set(p["w1"])
    P = P.at[Lp:Lp + h_size, :h_size].set(p["w2"])
    P = P.at[Lp + H_PAD:Lp + H_PAD + h_size, :OUT_DIM].set(p["w3"])
    base = Lp + 2 * H_PAD
    P = P.at[base + 0, :h_size].set(p["g1"][0])
    P = P.at[base + 1, :h_size].set(p["be1"][0])
    P = P.at[base + 2, :h_size].set(p["g2"][0])
    P = P.at[base + 3, :h_size].set(p["be2"][0])
    P = P.at[base + 4, :OUT_DIM].set(p["b3"][0])
    return P


def generator_forward(x, P):
    """x: (B, latent) f32, P: merged slab from pack_params.  Returns (B, 2) f32."""
    B = x.shape[0]
    vmem = pl.BlockSpec(memory_space=pltpu.MemorySpace.VMEM)
    return pl.pallas_call(
        _generator_kernel,
        out_shape=jax.ShapeDtypeStruct((B, OUT_DIM), jnp.float32),
        in_specs=[vmem, vmem],
        out_specs=vmem,
    )(x, P)


def init_params(key, latent_size, h_size):
    """PyTorch nn.Linear-style init (uniform +-1/sqrt(fan_in)); BN gamma=1, beta=0."""
    ks = jax.random.split(key, 6)

    def lin(kw, kb, fan_in, fan_out):
        bound = 1.0 / jnp.sqrt(jnp.float32(fan_in))
        w = jax.random.uniform(kw, (fan_in, fan_out), jnp.float32, -bound, bound)
        b = jax.random.uniform(kb, (1, fan_out), jnp.float32, -bound, bound)
        return w, b

    w1, b1 = lin(ks[0], ks[1], latent_size, h_size)
    w2, b2 = lin(ks[2], ks[3], h_size, h_size)
    w3, b3 = lin(ks[4], ks[5], h_size, 2)
    return {
        "w1": w1, "b1": b1,
        "g1": jnp.ones((1, h_size), jnp.float32),
        "be1": jnp.zeros((1, h_size), jnp.float32),
        "w2": w2, "b2": b2,
        "g2": jnp.ones((1, h_size), jnp.float32),
        "be2": jnp.zeros((1, h_size), jnp.float32),
        "w3": w3, "b3": b3,
    }


def reference_forward(x, p):
    """Pure-JAX reference with full PyTorch semantics (incl. b1/b2, unfolded BN)."""
    def bn(h, g, be):
        m = jnp.mean(h, axis=0, keepdims=True)
        v = jnp.mean((h - m) ** 2, axis=0, keepdims=True)
        return (h - m) / jnp.sqrt(v + BN_EPS) * g + be

    def lrelu(h):
        return jnp.where(h >= 0, h, LEAKY_SLOPE * h)

    h = lrelu(bn(x @ p["w1"] + p["b1"], p["g1"], p["be1"]))
    h = lrelu(bn(h @ p["w2"] + p["b2"], p["g2"], p["be2"]))
    return jnp.tanh(h @ p["w3"] + p["b3"])


if __name__ == "__main__":
    latent_size = 16
    h_size = 64
    batch = 8

    key = jax.random.PRNGKey(0)
    k_x, k_p = jax.random.split(key)
    x = jax.random.normal(k_x, (batch, latent_size), dtype=jnp.float32)
    params = init_params(k_p, latent_size, h_size)
    P = pack_params(params, latent_size, h_size)

    out = generator_forward(x, P)
    out = jax.block_until_ready(out)

    ref = reference_forward(x, params)
    assert out.shape == (batch, 2), out.shape
    assert jnp.allclose(out, ref, atol=1e-4, rtol=1e-4), (
        f"max abs err = {float(jnp.max(jnp.abs(out - ref)))}"
    )
    print("KERNEL_OK")
</pallas_src>

<mosaic_0001>
module attributes {stable_mosaic.version = 11 : i64} {
  func.func @_generator_kernel(%arg0: memref<8x16xf32, #tpu.memory_space<vmem>>, %arg1: memref<280x128xf32, #tpu.memory_space<vmem>>, %arg2: memref<8x2xf32, #tpu.memory_space<vmem>>) attributes {dimension_semantics = [], scalar_prefetch = 0 : i64, scratch_operands = 0 : i64, tpu.core_type = #tpu.core_type<tc>} {
    %c0 = arith.constant 0 : index
    %c0_0 = arith.constant 0 : index
    %0 = vector.load %arg0[%c0, %c0_0] : memref<8x16xf32, #tpu.memory_space<vmem>>, vector<8x16xf32>
    %c0_1 = arith.constant 0 : index
    %c0_2 = arith.constant 0 : index
    %1 = vector.load %arg1[%c0_1, %c0_2] : memref<280x128xf32, #tpu.memory_space<vmem>>, vector<16x128xf32>
    %c16 = arith.constant 16 : index
    %c0_3 = arith.constant 0 : index
    %2 = vector.load %arg1[%c16, %c0_3] : memref<280x128xf32, #tpu.memory_space<vmem>>, vector<128x128xf32>
    %c144 = arith.constant 144 : index
    %c0_4 = arith.constant 0 : index
    %3 = vector.load %arg1[%c144, %c0_4] : memref<280x128xf32, #tpu.memory_space<vmem>>, vector<128x128xf32>
    %c272 = arith.constant 272 : index
    %c0_5 = arith.constant 0 : index
    %4 = vector.load %arg1[%c272, %c0_5] : memref<280x128xf32, #tpu.memory_space<vmem>>, vector<8x128xf32>
    %5 = vector.extract_strided_slice %4 {offsets = [0, 0], sizes = [1, 128], strides = [1, 1]} : vector<8x128xf32> to vector<1x128xf32>
    %6 = vector.extract_strided_slice %4 {offsets = [1, 0], sizes = [1, 128], strides = [1, 1]} : vector<8x128xf32> to vector<1x128xf32>
    %7 = vector.extract_strided_slice %4 {offsets = [2, 0], sizes = [1, 128], strides = [1, 1]} : vector<8x128xf32> to vector<1x128xf32>
    %8 = vector.extract_strided_slice %4 {offsets = [3, 0], sizes = [1, 128], strides = [1, 1]} : vector<8x128xf32> to vector<1x128xf32>
    %9 = vector.extract_strided_slice %4 {offsets = [4, 0], sizes = [1, 128], strides = [1, 1]} : vector<8x128xf32> to vector<1x128xf32>
    %cst = arith.constant dense<0.000000e+00> : vector<8x128xf32>
    %10 = tpu.matmul %0, %1, %cst {dimension_numbers = #tpu.dot_dimension_numbers<[1], [0], [0], [1], [0, 0, 1, 1], [], []>} : vector<8x16xf32>, vector<16x128xf32>, vector<8x128xf32> -> vector<8x128xf32>
    %cst_6 = arith.constant dense<0.000000e+00> : vector<128xf32>
    %11 = vector.multi_reduction <add>, %10, %cst_6 [0] : vector<8x128xf32> to vector<128xf32>
    %12 = vector.shape_cast %11 : vector<128xf32> to vector<1x128xf32>
    %cst_7 = arith.constant 8.000000e+00 : f32
    %13 = vector.broadcast %cst_7 : f32 to vector<1x128xf32>
    %14 = arith.divf %12, %13 : vector<1x128xf32>
    %15 = arith.mulf %10, %10 : vector<8x128xf32>
    %cst_8 = arith.constant dense<0.000000e+00> : vector<128xf32>
    %16 = vector.multi_reduction <add>, %15, %cst_8 [0] : vector<8x128xf32> to vector<128xf32>
    %17 = vector.shape_cast %16 : vector<128xf32> to vector<1x128xf32>
    %cst_9 = arith.constant 8.000000e+00 : f32
    %18 = vector.broadcast %cst_9 : f32 to vector<1x128xf32>
    %19 = arith.divf %17, %18 : vector<1x128xf32>
    %20 = arith.mulf %14, %14 : vector<1x128xf32>
    %21 = arith.subf %19, %20 : vector<1x128xf32>
    %cst_10 = arith.constant 0.000000e+00 : f32
    %22 = vector.broadcast %cst_10 : f32 to vector<1x128xf32>
    %23 = arith.maximumf %21, %22 : vector<1x128xf32>
    %cst_11 = arith.constant 9.99999974E-6 : f32
    %24 = vector.broadcast %cst_11 : f32 to vector<1x128xf32>
    %25 = arith.addf %23, %24 : vector<1x128xf32>
    %26 = math.rsqrt %25 : vector<1x128xf32>
    %27 = arith.mulf %5, %26 : vector<1x128xf32>
    %28 = arith.mulf %14, %27 : vector<1x128xf32>
    %29 = arith.subf %6, %28 : vector<1x128xf32>
    %30 = vector.broadcast %27 : vector<1x128xf32> to vector<8x128xf32>
    %31 = arith.mulf %10, %30 : vector<8x128xf32>
    %32 = vector.broadcast %29 : vector<1x128xf32> to vector<8x128xf32>
    %33 = arith.addf %31, %32 : vector<8x128xf32>
    %cst_12 = arith.constant 2.000000e-02 : f32
    %34 = vector.broadcast %cst_12 : f32 to vector<8x128xf32>
    %35 = arith.mulf %34, %33 : vector<8x128xf32>
    %36 = arith.maximumf %33, %35 : vector<8x128xf32>
    %cst_13 = arith.constant dense<0.000000e+00> : vector<8x128xf32>
    %37 = tpu.matmul %36, %2, %cst_13 {dimension_numbers = #tpu.dot_dimension_numbers<[1], [0], [0], [1], [0, 0, 1, 1], [], []>} : vector<8x128xf32>, vector<128x128xf32>, vector<8x128xf32> -> vector<8x128xf32>
    %cst_14 = arith.constant dense<0.000000e+00> : vector<128xf32>
    %38 = vector.multi_reduction <add>, %37, %cst_14 [0] : vector<8x128xf32> to vector<128xf32>
    %39 = vector.shape_cast %38 : vector<128xf32> to vector<1x128xf32>
    %cst_15 = arith.constant 8.000000e+00 : f32
    %40 = vector.broadcast %cst_15 : f32 to vector<1x128xf32>
    %41 = arith.divf %39, %40 : vector<1x128xf32>
    %42 = arith.mulf %37, %37 : vector<8x128xf32>
    %cst_16 = arith.constant dense<0.000000e+00> : vector<128xf32>
    %43 = vector.multi_reduction <add>, %42, %cst_16 [0] : vector<8x128xf32> to vector<128xf32>
    %44 = vector.shape_cast %43 : vector<128xf32> to vector<1x128xf32>
    %cst_17 = arith.constant 8.000000e+00 : f32
    %45 = vector.broadcast %cst_17 : f32 to vector<1x128xf32>
    %46 = arith.divf %44, %45 : vector<1x128xf32>
    %47 = arith.mulf %41, %41 : vector<1x128xf32>
    %48 = arith.subf %46, %47 : vector<1x128xf32>
    %cst_18 = arith.constant 0.000000e+00 : f32
    %49 = vector.broadcast %cst_18 : f32 to vector<1x128xf32>
    %50 = arith.maximumf %48, %49 : vector<1x128xf32>
    %cst_19 = arith.constant 9.99999974E-6 : f32
    %51 = vector.broadcast %cst_19 : f32 to vector<1x128xf32>
    %52 = arith.addf %50, %51 : vector<1x128xf32>
    %53 = math.rsqrt %52 : vector<1x128xf32>
    %54 = arith.mulf %7, %53 : vector<1x128xf32>
    %55 = arith.mulf %41, %54 : vector<1x128xf32>
    %56 = arith.subf %8, %55 : vector<1x128xf32>
    %57 = vector.broadcast %54 : vector<1x128xf32> to vector<8x128xf32>
    %58 = arith.mulf %37, %57 : vector<8x128xf32>
    %59 = vector.broadcast %56 : vector<1x128xf32> to vector<8x128xf32>
    %60 = arith.addf %58, %59 : vector<8x128xf32>
    %cst_20 = arith.constant 2.000000e-02 : f32
    %61 = vector.broadcast %cst_20 : f32 to vector<8x128xf32>
    %62 = arith.mulf %61, %60 : vector<8x128xf32>
    %63 = arith.maximumf %60, %62 : vector<8x128xf32>
    %cst_21 = arith.constant dense<0.000000e+00> : vector<8x128xf32>
    %64 = tpu.matmul %63, %3, %cst_21 {dimension_numbers = #tpu.dot_dimension_numbers<[1], [0], [0], [1], [0, 0, 1, 1], [], []>} : vector<8x128xf32>, vector<128x128xf32>, vector<8x128xf32> -> vector<8x128xf32>
    %65 = vector.broadcast %9 : vector<1x128xf32> to vector<8x128xf32>
    %66 = arith.addf %64, %65 : vector<8x128xf32>
    %67 = vector.extract_strided_slice %66 {offsets = [0, 0], sizes = [8, 2], strides = [1, 1]} : vector<8x128xf32> to vector<8x2xf32>
    %68 = math.tanh %67 : vector<8x2xf32>
    %c0_22 = arith.constant 0 : index
    %c0_23 = arith.constant 0 : index
    %69 = vector.load %arg2[%c0_22, %c0_23] : memref<8x2xf32, #tpu.memory_space<vmem>>, vector<8x2xf32>
    tpu.vector_store %arg2[%c0_22, %c0_23], %68 {strides = array<i32>} : memref<8x2xf32, #tpu.memory_space<vmem>>, vector<8x2xf32>,
    return
  }
}

</mosaic_0001>

<bundles_post_ra>
// kernel: tpu_custom_call.1
= control target key start
LH: loop header
LB: loop body
LE: loop exit
PB: predicated region body
PF: predicated region fallthrough
CT: control target
= control target key end

     0   :  { %7 = vsyncpa [#allocation3], 0  ;;  %s691_s0 = inlined_call_operand.hbm [shape: f32[8,16], index: 0, kind: input, shape index: {}]   ;;  %s692_s1 = inlined_call_operand.hbm [shape: f32[280,128], index: 1, kind: input, shape index: {}]   ;;  %s693_s2 = inlined_call_operand.vmem [shape: f32[8,2], index: 2, kind: output, shape index: {}]  }
   0x1   :  { %8 = vsyncpa [#allocation5], 0  ;;  %s604_s9 = smov [#allocation2]   ;;  %s605_s11 = smov [#allocation4]  }
   0x2   :  { %s15_s10 = sshll.u32 %s604_s9, 4  ;;  %s24_s12 = sshll.u32 %s605_s11, 4  ;;  %s16_s10 = int_to_ptr.vmem [resolvable:$true] %s15_s10  ;;  %s626_s12 = int_to_ptr.vmem [resolvable:$true] %s24_s12 }
   0x3   :  { %s556_s15 = scalar_lea.hbm %s691_s0, 128 }
   0x4   :  { %p557_p0 = scmp.ne.s32.totalorder %s691_s0, %s556_s15  ;;  %p560_p1 = scmp.lt.u32.totalorder %s556_s15, %s691_s0 }
   0x6   :  { %p562_p2 = pnand %p560_p1, %p557_p0 }
   0x8   :  { %565 = shalt.err (!%p562_p2)
}
   0x9   :  { %s566_s20 = scalar_lea.vmem %s16_s10, 128  ;;  %p571_p4 = scmp.lt.s32.totalorder %s16_s10, %s16_s10 }
   0xa   :  { %p567_p3 = scmp.ne.s32.totalorder %s16_s10, %s566_s20  ;;  %p572_p5 = scmp.lt.s32.totalorder %s566_s20, %s566_s20 }
   0xc   :  { %p573_p6 = por %p572_p5, %p571_p4 }
   0xe   :  { %p574_p7 = pnand %p573_p6, %p567_p3 }
  0x10   :  { %577 = shalt.err (!%p574_p7)
}
  0x11   :  { %18 = dma.hbm_to_vmem [thread:$0]  %s691_s0, 128, %s16_s10, [#allocation3]  }
  0x12   :  { %s578_s25 = scalar_lea.hbm %s692_s1, 4480 }
  0x13   :  { %p579_p8 = scmp.ne.s32.totalorder %s692_s1, %s578_s25  ;;  %p582_p9 = scmp.lt.u32.totalorder %s578_s25, %s692_s1 }
  0x15   :  { %p584_p10 = pnand %p582_p9, %p579_p8 }
  0x17   :  { %587 = shalt.err (!%p584_p10)
}
  0x18   :  { %s588_s30 = scalar_lea.vmem %s626_s12, 4480  ;;  %p593_p12 = scmp.lt.s32.totalorder %s626_s12, %s626_s12 }
  0x19   :  { %p589_p11 = scmp.ne.s32.totalorder %s626_s12, %s588_s30  ;;  %p594_p13 = scmp.lt.s32.totalorder %s588_s30, %s588_s30 }
  0x1b   :  { %p595_p0 = por %p594_p13, %p593_p12 }
  0x1d   :  { %p596_p1 = pnand %p595_p0, %p589_p11 }
  0x1f   :  { %599 = shalt.err (!%p596_p1)
}
  0x20   :  { %s606_s0 = smov 128   ;;  %s607_s3 = smov 8  }
  0x21   :  { %30 = dma.hbm_to_vmem [thread:$0]  %s692_s1, 4480, %s626_s12, [#allocation5], %s606_s0, %s606_s0, %s607_s3  }
  0x22   :  { %600 = dma.done.wait [#allocation3], 128  }
  0x23   :  { %601 = vsyncadd [#allocation3], 4294967168 }
  0x24   :  { %602 = dma.done.wait [#allocation5], 4480  }
  0x25   :  { %603 = vsyncadd [#allocation5], 4294962816  ;;  %v608_v0 = vmov 0.0|0.0   ;;  %vm609_vm0 = vmmov 0   ;;  %v610_v1 = vmov 0.0   ;;  %v38_v2 = vld [vmem:[#allocation4] sm:$0xff]  ;;  %v174_v51 = vlaneseq }
  0x26   :  { %492 = vmatprep.subr.bf16.mxu0 %v608_v0  ;;  %419 = vmatprep.mubr.msk.f32.mxu0 %vm609_vm0, %v610_v1  ;;  %v39_v3 = vld [vmem:[#allocation4 + $0x8] sm:$0xff]  ;;  %v37_v5 = vld [vmem:[#allocation2] sm:$0xff]  ;;  %vm73_vm1 = vcmask 130048   ;;  %v40_v6 = vld [vmem:[#allocation4 + $0x10] sm:$0xff]  ;;  %vm369_vm2 = vcmask 15360  }
  0x27   :  { %495 = vmatprep.subr.bf16.mxu1 %v608_v0  ;;  %454 = vmatprep.mubr.msk.f32.mxu1 %vm609_vm0, %v610_v1  ;;  %v493_v4 = vpack.c.bf16 %v39_v3, %v38_v2  ;;  %v41_v7 = vld [vmem:[#allocation4 + $0x18] sm:$0xff]  ;;  %v42_v9 = vld [vmem:[#allocation4 + $0x20] sm:$0xff]  ;;  %v43_v10 = vld [vmem:[#allocation4 + $0x28] sm:$0xff]  ;;  %v667_v52 = vshrl.u32 %v174_v51, 7 }
  0x28   :  { %v496_v8 = vpack.c.bf16 %v41_v7, %v40_v6  ;;  %v499_v11 = vpack.c.bf16 %v43_v10, %v42_v9  ;;  %v44_v12 = vld [vmem:[#allocation4 + $0x30] sm:$0xff]  ;;  %v45_v13 = vld [vmem:[#allocation4 + $0x38] sm:$0xff]  ;;  %v46_v15 = vld [vmem:[#allocation4 + $0x40] sm:$0xff] }
  0x29   :  { %494 = vmatpush3.bf16.msra.mxu0 %v493_v4  ;;  %v502_v14 = vpack.c.bf16 %v45_v13, %v44_v12  ;;  %v47_v16 = vld [vmem:[#allocation4 + $0x48] sm:$0xff]  ;;  %v48_v18 = vld [vmem:[#allocation4 + $0x50] sm:$0xff]  ;;  %v49_v19 = vld [vmem:[#allocation4 + $0x58] sm:$0xff]  ;;  %v176_v56 = vsub.s32 0, %v667_v52  ;;  %v181_v60 = vsub.s32 1, %v667_v52 }
  0x2a   :  { %519 = vmatprep.subr.bf16.mxu0 %v608_v0  ;;  %497 = vmatpush3.bf16.msra.mxu1 %v496_v8  ;;  %v505_v17 = vpack.c.bf16 %v47_v16, %v46_v15  ;;  %v508_v20 = vpack.c.bf16 %v49_v19, %v48_v18  ;;  %v50_v21 = vld [vmem:[#allocation4 + $0x60] sm:$0xff]  ;;  %v51_v22 = vld [vmem:[#allocation4 + $0x68] sm:$0xff]  ;;  %v52_v24 = vld [vmem:[#allocation4 + $0x70] sm:$0xff] }
  0x2b   :  { %498 = vmatprep.subr.bf16.mxu1 %v608_v0  ;;  %v511_v23 = vpack.c.bf16 %v51_v22, %v50_v21  ;;  %v53_v25 = vld [vmem:[#allocation4 + $0x78] sm:$0xff]  ;;  %v54_v27 = vld [vmem:[#allocation4 + $0x80] sm:$0xff]  ;;  %v55_v28 = vld [vmem:[#allocation4 + $0x88] sm:$0xff] }
  0x2c   :  { %420 = vmatmul.mubr.msk.f32.vlgmr.msra.gmra.mrb[0].mxu0 %vm73_vm1, %v37_v5  ;;  %v514_v26 = vpack.c.bf16 %v53_v25, %v52_v24  ;;  %v517_v29 = vpack.c.bf16 %v55_v28, %v54_v27  ;;  %v669_v53 = vld [vmem:[#allocation4 + $0x110] sm:$0xff]  ;;  %v57_v5 = vld [vmem:[#allocation4 + $0x98] sm:$0xff]  ;;  %v58_v7 = vld [vmem:[#allocation4 + $0xa0] sm:$0xff] }
  0x2d   :  { %489 = vmatprep.mubr.msk.f32.mxu0 %vm609_vm0, %v610_v1  ;;  %v56_v4 = vld [vmem:[#allocation4 + $0x90] sm:$0xff]  ;;  %v59_v8 = vld [vmem:[#allocation4 + $0xa8] sm:$0xff]  ;;  %v62_v13 = vld [vmem:[#allocation4 + $0xc0] sm:$0xff] }
  0x2e   :  { %500 = vmatpush3.bf16.msra.mxu1 %v499_v11  ;;  %v520_v6 = vpack.c.bf16 %v57_v5, %v56_v4  ;;  %v523_v9 = vpack.c.bf16 %v59_v8, %v58_v7  ;;  %v60_v10 = vld [vmem:[#allocation4 + $0xb0] sm:$0xff]  ;;  %v61_v11 = vld [vmem:[#allocation4 + $0xb8] sm:$0xff]  ;;  %v66_v19 = vld [vmem:[#allocation4 + $0xe0] sm:$0xff] }
  0x2f   :  { %501 = vmatprep.subr.bf16.mxu1 %v608_v0  ;;  %v526_v12 = vpack.c.bf16 %v61_v11, %v60_v10  ;;  %v64_v16 = vld [vmem:[#allocation4 + $0xd0] sm:$0xff]  ;;  %v70_v25 = vld [vmem:[#allocation4 + $0x100] sm:$0xff] }
  0x30   :  { %521 = vmatpush3.bf16.msra.mxu0 %v520_v6  ;;  %v68_v22 = vld [vmem:[#allocation4 + $0xf0] sm:$0xff] }
  0x31   :  { %522 = vmatprep.subr.bf16.mxu0 %v608_v0 }
  0x32   :  { %503 = vmatpush3.bf16.msra.mxu1 %v502_v14  ;;  %v63_v14 = vld [vmem:[#allocation4 + $0xc8] sm:$0xff] }
  0x33   :  { %504 = vmatprep.subr.bf16.mxu1 %v608_v0  ;;  %v529_v15 = vpack.c.bf16 %v63_v14, %v62_v13 }
  0x34   :  { %524 = vmatpush3.bf16.msra.mxu0 %v523_v9 }
  0x35   :  { %525 = vmatprep.subr.bf16.mxu0 %v608_v0 }
  0x36   :  { %506 = vmatpush3.bf16.msra.mxu1 %v505_v17  ;;  %v65_v17 = vld [vmem:[#allocation4 + $0xd8] sm:$0xff] }
  0x37   :  { %507 = vmatprep.subr.bf16.mxu1 %v608_v0  ;;  %v532_v18 = vpack.c.bf16 %v65_v17, %v64_v16 }
  0x38   :  { %527 = vmatpush3.bf16.msra.mxu0 %v526_v12 }
  0x39   :  { %528 = vmatprep.subr.bf16.mxu0 %v608_v0 }
  0x3a   :  { %509 = vmatpush3.bf16.msra.mxu1 %v508_v20  ;;  %v67_v20 = vld [vmem:[#allocation4 + $0xe8] sm:$0xff] }
  0x3b   :  { %510 = vmatprep.subr.bf16.mxu1 %v608_v0  ;;  %v535_v21 = vpack.c.bf16 %v67_v20, %v66_v19 }
  0x3c   :  { %530 = vmatpush3.bf16.msra.mxu0 %v529_v15 }
  0x3d   :  { %531 = vmatprep.subr.bf16.mxu0 %v608_v0 }
  0x3e   :  { %512 = vmatpush3.bf16.msra.mxu1 %v511_v23  ;;  %v69_v23 = vld [vmem:[#allocation4 + $0xf8] sm:$0xff] }
  0x3f   :  { %513 = vmatprep.subr.bf16.mxu1 %v608_v0  ;;  %v538_v24 = vpack.c.bf16 %v69_v23, %v68_v22 }
  0x40   :  { %533 = vmatpush3.bf16.msra.mxu0 %v532_v18 }
  0x41   :  { %534 = vmatprep.subr.bf16.mxu0 %v608_v0 }
  0x42   :  { %515 = vmatpush3.bf16.msra.mxu1 %v514_v26  ;;  %v71_v26 = vld [vmem:[#allocation4 + $0x108] sm:$0xff] }
  0x43   :  { %516 = vmatprep.subr.bf16.mxu1 %v608_v0  ;;  %v541_v27 = vpack.c.bf16 %v71_v26, %v70_v25 }
  0x44   :  { %536 = vmatpush3.bf16.msra.mxu0 %v535_v21 }
  0x45   :  { %537 = vmatprep.subr.bf16.mxu0 %v608_v0 }
  0x46   :  { %518 = vmatpush3.bf16.msra.mxu1 %v517_v29 }
  0x48   :  { %539 = vmatpush3.bf16.msra.mxu0 %v538_v24 }
  0x49   :  { %540 = vmatprep.subr.bf16.mxu0 %v608_v0 }
  0x4c   :  { %542 = vmatpush3.bf16.msra.mxu0 %v541_v27 }
  0xff   :  { %v143_v30 = vpop.f32.mrb[0].mxu0 }
 0x100   :  { %v147_v31 = vrot.slane %v143_v30, 4  ;;  %v155_v32 = vmul.f32 %v143_v30, %v143_v30  ;;  %v421_v33 = vpop.f32.mrb[1].mxu0 }
 0x102   :  { %v148_v34 = vadd.f32 %v147_v31, %v143_v30  ;;  %v156_v35 = vrot.slane %v155_v32, 4 }
 0x104   :  { %v149_v36 = vrot.slane %v148_v34, 2  ;;  %v157_v37 = vadd.f32 %v156_v35, %v155_v32 }
 0x106   :  { %v150_v38 = vadd.f32 %v149_v36, %v148_v34  ;;  %v158_v39 = vrot.slane %v157_v37, 2 }
 0x108   :  { %v151_v40 = vrot.slane %v150_v38, 1  ;;  %v159_v41 = vadd.f32 %v158_v39, %v157_v37 }
 0x10a   :  { %v152_v42 = vadd.f32 %v151_v40, %v150_v38  ;;  %v160_v43 = vrot.slane %v159_v41, 1 }
 0x10c   :  { %v154_v44 = vmul.f32 0.125, %v152_v42  ;;  %v161_v45 = vadd.f32 %v160_v43, %v159_v41 }
 0x10e   :  { %v162_v46 = vmul.f32 0.125, %v161_v45  ;;  %v163_v47 = vmul.f32 %v154_v44, %v154_v44 }
 0x110   :  { %v164_v48 = vsub.f32 %v162_v46, %v163_v47 }
 0x112   :  { %v165_v49 = vmax.f32 %v164_v48, 0.0 }
 0x114   :  { %v166_v50 = vadd.f32 1e-05, %v165_v49 }
 0x116   :  { %550 = vrsqrt.f32 %v166_v50  ;;  %v284_v50 = vsub.s32 2, %v667_v52 }
 0x120   :  { %v551_v54 = vpop.eup %550 }
 0x121   :  { %v168_v55 = vmul.f32 %v551_v54, %v669_v53 }
 0x123   :  { %v169_v57 = vmul.f32 %v168_v55, %v154_v44  ;;  %v177_v58 = vrot.slane %v168_v55, %v176_v56  ;;  %v289_v56 = vsub.s32 3, %v667_v52 }
 0x125   :  { %v171_v59 = vrot.slane %v169_v57, 7  ;;  %v178_v62 = vmul.f32 %v177_v58, %v143_v30 }
 0x127   :  { %v173_v61 = vsub.f32 %v669_v53, %v171_v59 }
 0x129   :  { %v182_v63 = vrot.slane %v173_v61, %v181_v60 }
 0x12b   :  { %v183_v1 = vadd.f32 %v182_v63, %v178_v62  ;;  %v296_v63 = vsub.s32 4, %v667_v52 }
 0x12d   :  { %v184_v2 = vmul.f32 0.02, %v183_v1 }
 0x12f   :  { %v185_v3 = vmax.f32 %v183_v1, %v184_v2  ;;  %v297_v1 = vrot.slane %v669_v53, %v296_v63 }
 0x131   :  { %455 = vmatmul.mubr.f32.vlgmr.msra.gmra.mrb[0].mxu1 %v185_v3 }
 0x204   :  { %v252_v28 = vpop.f32.mrb[0].mxu1 }
 0x205   :  { %v256_v29 = vrot.slane %v252_v28, 4  ;;  %v263_v30 = vmul.f32 %v252_v28, %v252_v28  ;;  %v456_v31 = vpop.f32.mrb[1].mxu1 }
 0x207   :  { %v257_v32 = vadd.f32 %v256_v29, %v252_v28  ;;  %v264_v33 = vrot.slane %v263_v30, 4 }
 0x209   :  { %v258_v34 = vrot.slane %v257_v32, 2  ;;  %v265_v35 = vadd.f32 %v264_v33, %v263_v30 }
 0x20b   :  { %v259_v36 = vadd.f32 %v258_v34, %v257_v32  ;;  %v266_v37 = vrot.slane %v265_v35, 2 }
 0x20d   :  { %v260_v38 = vrot.slane %v259_v36, 1  ;;  %v267_v39 = vadd.f32 %v266_v37, %v265_v35 }
 0x20f   :  { %v261_v40 = vadd.f32 %v260_v38, %v259_v36  ;;  %v268_v41 = vrot.slane %v267_v39, 1 }
 0x211   :  { %v262_v42 = vmul.f32 0.125, %v261_v40  ;;  %v269_v0 = vadd.f32 %v268_v41, %v267_v39 }
 0x213   :  { %v270_v43 = vmul.f32 0.125, %v269_v0  ;;  %v271_v44 = vmul.f32 %v262_v42, %v262_v42 }
 0x215   :  { %v272_v45 = vsub.f32 %v270_v43, %v271_v44 }
 0x217   :  { %v273_v46 = vmax.f32 %v272_v45, 0.0 }
 0x219   :  { %v274_v47 = vadd.f32 1e-05, %v273_v46 }
 0x21b   :  { %552 = vrsqrt.f32 %v274_v47 }
 0x225   :  { %v553_v48 = vpop.eup %552 }
 0x226   :  { %v276_v49 = vmul.f32 %v553_v48, %v669_v53 }
 0x228   :  { %v277_v51 = vmul.f32 %v276_v49, %v262_v42  ;;  %v285_v55 = vrot.slane %v276_v49, %v284_v50 }
 0x22a   :  { %v279_v54 = vrot.slane %v277_v51, 7  ;;  %v286_v58 = vmul.f32 %v285_v55, %v252_v28 }
 0x22c   :  { %v281_v57 = vsub.f32 %v669_v53, %v279_v54 }
 0x22e   :  { %v290_v59 = vrot.slane %v281_v57, %v289_v56 }
 0x230   :  { %v291_v60 = vadd.f32 %v290_v59, %v286_v58 }
 0x232   :  { %v292_v61 = vmul.f32 0.02, %v291_v60 }
 0x234   :  { %v293_v62 = vmax.f32 %v291_v60, %v292_v61 }
 0x236   :  { %490 = vmatmul.mubr.f32.vlgmr.msra.gmra.mrb[2].mxu0 %v293_v62 }
 0x309   :  { %v364_v2 = vpop.f32.mrb[2].mxu0 }
 0x30a   :  { %v365_v3 = vadd.f32 %v364_v2, %v297_v1  ;;  %v491_v4 = vpop.f32.mrb[3].mxu0 }
 0x30c   :  { %554 = vtanh.f32 %v365_v3 }
 0x316   :  { %v555_v5 = vpop.eup %554 }
 0x317   :  { %370 = vst.msk [vmem:[%s693_s2] sm:$0xff] %vm369_vm2, %v555_v5 }
 0x318   :  { %375 = vsyncpa [#allocation3], 1 }
 0x319   :  { %376 = vsyncpa [#allocation5], 1 }

</bundles_post_ra>
